<compile_context>
chip_gen: v7x
topology: tpu7x:2x2x1
jax: 0.10.0
libtpu: 0.0.40
codegen_flags: <defaults>
</compile_context>

<pallas_src>
import functools

import jax
import jax.numpy as jnp
from jax.experimental import pallas as pl
from jax.experimental.pallas import tpu as pltpu


def tastenet_combo_kernel(z_ref, w1_ref, b1_ref, w2_ref, b2_ref, out_ref,
                          *, activation, transform):
    # z_ref  : (TILE_N, D)   batch-major tile of individual characteristics
    # w1_ref : (D, 2H)       fused first-layer weight       (resident in VMEM)
    # b1_ref : (1, 2H)
    # w2_ref : (2H, 2)       block-diagonal second layer    (resident in VMEM)
    # b2_ref : (1, 2)
    # out_ref: (TILE_N, 2)   column 0 = taste_time, column 1 = taste_wait
    z = z_ref[...]

    # L1 for both nets at once (MXU) + activation (VPU/EUP).
    h = jnp.dot(z, w1_ref[...], preferred_element_type=jnp.float32) + b1_ref[...]
    if activation == "relu":
        h = jnp.maximum(h, 0.0)
    elif activation == "tanh":
        h = jnp.tanh(h)
    # else: no activation (matches get_act returning None)

    # L2: block-diagonal Linear(2H, 2) -> both coefficients in one matmul.
    y = jnp.dot(h, w2_ref[...], preferred_element_type=jnp.float32) + b2_ref[...]

    # Output transform (matches TasteNet.forward branches).
    if transform == "exp":
        out_ref[...] = -jnp.exp(-y)
    elif transform == "relu":
        out_ref[...] = -jnp.maximum(-y, 0.0)
    else:
        out_ref[...] = y


def tastenet_combo(z, params, *, tile_n=1024, activation="relu", transform="exp"):
    """z: (N, D) float32.

    params = (w1t, b1t, w2t, b2t, w1w, b1w, w2w, b2w) with first-layer weights
    stored as (D, H) / biases (1, H) and second-layer weights (H, 1) / biases (1, 1).
    Returns (N, 2): column 0 = taste_time coefficient, column 1 = taste_wait.
    """
    w1t, b1t, w2t, b2t, w1w, b1w, w2w, b2w = params
    N, D = z.shape
    H = w1t.shape[1]
    H2 = 2 * H

    # ---- fuse the two TasteNets (weight prep; constant-folded under jit) ----
    w1_all = jnp.concatenate([w1t, w1w], axis=1).astype(jnp.float32)        # (D, 2H)
    b1_all = jnp.concatenate([b1t, b1w], axis=1).astype(jnp.float32)        # (1, 2H)
    w2_all = jnp.concatenate(
        [jnp.concatenate([w2t, jnp.zeros_like(w2t)], axis=1),               # [w2t | 0 ]
         jnp.concatenate([jnp.zeros_like(w2w), w2w], axis=1)],              # [ 0  | w2w]
        axis=0).astype(jnp.float32)                                         # (2H, 2)
    b2_all = jnp.concatenate([b2t, b2w], axis=1).astype(jnp.float32)        # (1, 2)

    # Sublane-aligned batch tile; last (lane) dim of the z block is the full D, which is
    # allowed regardless of the 128-lane rule.  Partial last tile handled by Pallas.
    tile_n = max(8, (tile_n // 8) * 8)
    grid = (pl.cdiv(N, tile_n),)

    kernel = functools.partial(
        tastenet_combo_kernel, activation=activation, transform=transform)

    out = pl.pallas_call(
        kernel,
        out_shape=jax.ShapeDtypeStruct((N, 2), jnp.float32),
        grid=grid,
        in_specs=[
            pl.BlockSpec((tile_n, D), lambda i: (i, 0)),   # z tile: pipelined over batch
            pl.BlockSpec((D, H2), lambda i: (0, 0)),       # weights: constant index_map,
            pl.BlockSpec((1, H2), lambda i: (0, 0)),       # DMA'd once, stay resident
            pl.BlockSpec((H2, 2), lambda i: (0, 0)),
            pl.BlockSpec((1, 2), lambda i: (0, 0)),
        ],
        out_specs=pl.BlockSpec((tile_n, 2), lambda i: (i, 0)),
        compiler_params=pltpu.CompilerParams(
            dimension_semantics=("parallel",),             # batch tiles are independent
        ),
    )(z.astype(jnp.float32), w1_all, b1_all, w2_all, b2_all)

    return out                                             # (N, 2)


def reference(z, params):
    w1t, b1t, w2t, b2t, w1w, b1w, w2w, b2w = params

    def net(w1, b1, w2, b2):
        h = jnp.maximum(z @ w1 + b1, 0.0)
        y = h @ w2 + b2
        return -jnp.exp(-y)

    bt = net(w1t, b1t, w2t, b2t)
    bw = net(w1w, b1w, w2w, b2w)
    return jnp.concatenate([bt.reshape(-1, 1), bw.reshape(-1, 1)], axis=1)


if __name__ == "__main__":
    # Config reproduced from TasteNet(args): layer_sizes=[D, H, 1], activation='relu',
    # transform='exp'.  N deliberately not a tile multiple to exercise the partial tile.
    N, D, H = 1000, 8, 32

    key = jax.random.PRNGKey(0)
    keys = jax.random.split(key, 9)
    z = jax.random.normal(keys[0], (N, D), dtype=jnp.float32)

    def init_linear(kw, kb, in_size, out_size):
        # Deterministic init (uniform a la PyTorch default), weight stored as (in, out).
        bound = 1.0 / jnp.sqrt(in_size)
        w = jax.random.uniform(kw, (in_size, out_size), jnp.float32, -bound, bound)
        b = jax.random.uniform(kb, (1, out_size), jnp.float32, -bound, bound)
        return w, b

    # taste_time net
    w1t, b1t = init_linear(keys[1], keys[2], D, H)
    w2t, b2t = init_linear(keys[3], keys[4], H, 1)
    # taste_wait net
    w1w, b1w = init_linear(keys[5], keys[6], D, H)
    w2w, b2w = init_linear(keys[7], keys[8], H, 1)
    params = (w1t, b1t, w2t, b2t, w1w, b1w, w2w, b2w)

    fn = jax.jit(functools.partial(tastenet_combo, tile_n=256))   # 4 tiles, last partial
    out = jax.block_until_ready(fn(z, params))

    ref = reference(z, params)
    assert out.shape == (N, 2), out.shape
    assert jnp.allclose(out, ref, atol=1e-5, rtol=1e-5), float(jnp.max(jnp.abs(out - ref)))

    print("KERNEL_OK")
</pallas_src>

<mosaic_0001>
module attributes {stable_mosaic.version = 11 : i64} {
  func.func @tastenet_combo_kernel(%arg0: i32, %arg1: memref<256x8xf32, #tpu.memory_space<vmem>>, %arg2: memref<8x64xf32, #tpu.memory_space<vmem>>, %arg3: memref<1x64xf32, #tpu.memory_space<vmem>>, %arg4: memref<64x2xf32, #tpu.memory_space<vmem>>, %arg5: memref<1x2xf32, #tpu.memory_space<vmem>>, %arg6: memref<256x2xf32, #tpu.memory_space<vmem>>) attributes {dimension_semantics = [#tpu.dimension_semantics<parallel>], iteration_bounds = array<i64: 4>, scalar_prefetch = 0 : i64, scratch_operands = 0 : i64, tpu.core_type = #tpu.core_type<tc>, window_params = [{transform_indices = @transform_0, window_bounds = array<i64: 256, 8>}, {pipeline_mode = #tpu.pipeline_mode<synchronous>, transform_indices = @transform_1, window_bounds = array<i64: 8, 64>}, {pipeline_mode = #tpu.pipeline_mode<synchronous>, transform_indices = @transform_2, window_bounds = array<i64: 1, 64>}, {pipeline_mode = #tpu.pipeline_mode<synchronous>, transform_indices = @transform_3, window_bounds = array<i64: 64, 2>}, {pipeline_mode = #tpu.pipeline_mode<synchronous>, transform_indices = @transform_4, window_bounds = array<i64: 1, 2>}, {transform_indices = @transform_5, window_bounds = array<i64: 256, 2>}]} {
    %c0 = arith.constant 0 : index
    %c0_0 = arith.constant 0 : index
    %0 = vector.load %arg1[%c0, %c0_0] : memref<256x8xf32, #tpu.memory_space<vmem>>, vector<256x8xf32>
    %c0_1 = arith.constant 0 : index
    %c0_2 = arith.constant 0 : index
    %1 = vector.load %arg2[%c0_1, %c0_2] : memref<8x64xf32, #tpu.memory_space<vmem>>, vector<8x64xf32>
    %cst = arith.constant dense<0.000000e+00> : vector<256x64xf32>
    %2 = tpu.matmul %0, %1, %cst {dimension_numbers = #tpu.dot_dimension_numbers<[1], [0], [0], [1], [0, 0, 1, 1], [], []>} : vector<256x8xf32>, vector<8x64xf32>, vector<256x64xf32> -> vector<256x64xf32>
    %c0_3 = arith.constant 0 : index
    %c0_4 = arith.constant 0 : index
    %3 = vector.load %arg3[%c0_3, %c0_4] : memref<1x64xf32, #tpu.memory_space<vmem>>, vector<1x64xf32>
    %4 = vector.broadcast %3 : vector<1x64xf32> to vector<256x64xf32>
    %5 = arith.addf %2, %4 : vector<256x64xf32>
    %cst_5 = arith.constant 0.000000e+00 : f32
    %6 = vector.broadcast %cst_5 : f32 to vector<256x64xf32>
    %7 = arith.maximumf %5, %6 : vector<256x64xf32>
    %c0_6 = arith.constant 0 : index
    %c0_7 = arith.constant 0 : index
    %8 = vector.load %arg4[%c0_6, %c0_7] : memref<64x2xf32, #tpu.memory_space<vmem>>, vector<64x2xf32>
    %cst_8 = arith.constant dense<0.000000e+00> : vector<256x2xf32>
    %9 = tpu.matmul %7, %8, %cst_8 {dimension_numbers = #tpu.dot_dimension_numbers<[1], [0], [0], [1], [0, 0, 1, 1], [], []>} : vector<256x64xf32>, vector<64x2xf32>, vector<256x2xf32> -> vector<256x2xf32>
    %c0_9 = arith.constant 0 : index
    %c0_10 = arith.constant 0 : index
    %10 = vector.load %arg5[%c0_9, %c0_10] : memref<1x2xf32, #tpu.memory_space<vmem>>, vector<1x2xf32>
    %11 = vector.broadcast %10 : vector<1x2xf32> to vector<256x2xf32>
    %12 = arith.addf %9, %11 : vector<256x2xf32>
    %cst_11 = arith.constant 0.000000e+00 : f32
    %13 = vector.broadcast %cst_11 : f32 to vector<256x2xf32>
    %14 = arith.subf %13, %12 : vector<256x2xf32>
    %15 = math.exp %14 : vector<256x2xf32>
    %cst_12 = arith.constant 0.000000e+00 : f32
    %16 = vector.broadcast %cst_12 : f32 to vector<256x2xf32>
    %17 = arith.subf %16, %15 : vector<256x2xf32>
    %c0_13 = arith.constant 0 : index
    %c0_14 = arith.constant 0 : index
    %18 = vector.load %arg6[%c0_13, %c0_14] : memref<256x2xf32, #tpu.memory_space<vmem>>, vector<256x2xf32>
    tpu.vector_store %arg6[%c0_13, %c0_14], %17 {strides = array<i32>} : memref<256x2xf32, #tpu.memory_space<vmem>>, vector<256x2xf32>,
    return
  }
  func.func @transform_0(%arg0: i32) -> (i32, i32) {
    %c0_i32 = arith.constant 0 : i32
    %c0_i32_0 = arith.constant 0 : i32
    return %arg0, %c0_i32 : i32, i32
  }
  func.func @transform_1(%arg0: i32) -> (i32, i32) {
    %c0_i32 = arith.constant 0 : i32
    %c0_i32_0 = arith.constant 0 : i32
    %c0_i32_1 = arith.constant 0 : i32
    return %c0_i32, %c0_i32_0 : i32, i32
  }
  func.func @transform_2(%arg0: i32) -> (i32, i32) {
    %c0_i32 = arith.constant 0 : i32
    %c0_i32_0 = arith.constant 0 : i32
    %c0_i32_1 = arith.constant 0 : i32
    return %c0_i32, %c0_i32_0 : i32, i32
  }
  func.func @transform_3(%arg0: i32) -> (i32, i32) {
    %c0_i32 = arith.constant 0 : i32
    %c0_i32_0 = arith.constant 0 : i32
    %c0_i32_1 = arith.constant 0 : i32
    return %c0_i32, %c0_i32_0 : i32, i32
  }
  func.func @transform_4(%arg0: i32) -> (i32, i32) {
    %c0_i32 = arith.constant 0 : i32
    %c0_i32_0 = arith.constant 0 : i32
    %c0_i32_1 = arith.constant 0 : i32
    return %c0_i32, %c0_i32_0 : i32, i32
  }
  func.func @transform_5(%arg0: i32) -> (i32, i32) {
    %c0_i32 = arith.constant 0 : i32
    %c0_i32_0 = arith.constant 0 : i32
    return %arg0, %c0_i32 : i32, i32
  }
}

</mosaic_0001>

<bundles_post_ra>
// kernel: tastenet_combo.1
= control target key start
LH: loop header
LB: loop body
LE: loop exit
PB: predicated region body
PF: predicated region fallthrough
CT: control target
= control target key end

     0   :  { %s2051_s18 = smov 0   ;;  %s2053_s19 = smov 0   ;;  %s2493_s0 = inlined_call_operand.vmem [shape: f32[1000,8], index: 0, kind: input, shape index: {}]   ;;  %s2494_s1 = inlined_call_operand.vmem [shape: f32[8,64], index: 1, kind: input, shape index: {}]   ;;  %s2495_s2 = inlined_call_operand.vmem [shape: f32[1,64], index: 2, kind: input, shape index: {}]   ;;  %s2496_s3 = inlined_call_operand.vmem [shape: f32[64,2], index: 3, kind: input, shape index: {}]   ;;  %s2497_s4 = inlined_call_operand.vmem [shape: f32[1,2], index: 4, kind: input, shape index: {}]   ;;  %s2498_s5 = inlined_call_operand.vmem [shape: f32[1000,2], index: 5, kind: output, shape index: {}]  }
   0x1   :  { %s2055_s20 = smov 0  }
   0x2 LB: > { %s2064_s21 = sadd.s32 4294967295, %s1987_s20   ;;  %s2066_s22 = sadd.s32 1, %s1987_s20   ;;  %s1987_s20 = sphi %s2055_s20, %s2507_s20   ;;  %s1983_s19 = sphi %s2053_s19, %s2506_s19   ;;  %s1979_s18 = sphi %s2051_s18, %s2505_s18  }
   0x3   : > { %s129_s23 = ssub.s32 %s1987_s20, %s2066_s22  ;;  %s132_s24 = sadd.s32 1, %s1983_s19 }
   0x4   : > { %p130_p0 = scmp.eq.s32.totalorder %s129_s23, 0  ;;  %p142_p1 = scmp.ne.s32.totalorder %s1983_s19, %s1979_s18 }
   0x5   : > { %p143_p2 = scmp.eq.s32.totalorder %s2064_s21, 3  ;;  %p1480_p3 = scmp.ge.s32.totalorder %s1987_s20, 1 }
   0x6   : > { %s2074_s25 = scalar_select %p130_p0, %s1983_s19, %s132_s24  }
   0x7   : > { %p2076_p4 = por %p143_p2, %p142_p1  ;;  %p196_p5 = scmp.lt.s32.totalorder %s1987_s20, 5 }
   0x9   : > { %p197_p6 = pnand %p1480_p3, %p196_p5 }
   0xa   : > { %v278_v0 = vld [vmem:[%s2494_s1] sm:$0xff] (!%p197_p6)  ;;  %s2084_s29 = sshll.u32 (!%p197_p6), %s2064_s21, 5  ;;  %v641_v2 = vld [vmem:[%s2496_s3 + $0x8] sm:$0xff] (!%p197_p6)  ;;  %v642_v4 = vld [vmem:[%s2496_s3 + $0x10] sm:$0xff] (!%p197_p6)  ;;  %vm286_vm0 = vcmask (!%p197_p6), 64512   ;;  %vm655_vm1 = vcmask (!%p197_p6), 523264  }
   0xb   : > { %200 = sbr.rel (%p197_p6) target bundleno = 591 (0x24f), region = 40  ;;  %v640_v1 = vld [vmem:[%s2496_s3] sm:$0xff] (!%p197_p6)  ;;  %1643 = vmatprep.subr.mxu0 (!%p197_p6), %v278_v0  ;;  %p232_p7 = scmp.lt.s32.totalorder (!%p197_p6), %s2084_s29, 124  ;;  %v643_v5 = vld [vmem:[%s2496_s3 + $0x18] sm:$0xff] (!%p197_p6)  ;;  %v645_v8 = vld [vmem:[%s2496_s3 + $0x28] sm:$0xff] (!%p197_p6)  ;;  %vm1105_vm2 = vcmask (!%p197_p6), 15360  }
   0xc   : > { %v1757_v3 = vpack.c.bf16 (!%p197_p6), %v641_v2, %v640_v1  ;;  %1644 = vmatpush3.msra.mxu0 (!%p197_p6), %v278_v0  ;;  %v1761_v6 = vpack.c.bf16 (!%p197_p6), %v643_v5, %v642_v4  ;;  %v644_v7 = vld [vmem:[%s2496_s3 + $0x20] sm:$0xff] (!%p197_p6)  ;;  %v646_v42 = vld [vmem:[%s2496_s3 + $0x30] sm:$0xff] (!%p197_p6)  ;;  %v647_v43 = vld [vmem:[%s2496_s3 + $0x38] sm:$0xff] (!%p197_p6)  ;;  %s224_s12 = sand.u32 (!%p197_p6), 1, %s1979_s18  }
   0xd   : > { %v1765_v12 = vpack.c.bf16 (!%p197_p6), %v645_v8, %v644_v7  ;;  %v1769_v44 = vpack.c.bf16 (!%p197_p6), %v647_v43, %v646_v42  ;;  %v2184_v45 = vld [vmem:[%s2495_s2] ss:$0 sm:$0xff] (!%p197_p6) }
   0xe   : > { %1758 = vmatprep.subr.bf16.mxu0 (!%p197_p6), %v1757_v3  ;;  %1773 = vmatprep.subr.bf16.mxu1 (!%p197_p6), %v1757_v3 }
   0xf   : > { %1777 = vmatpush3.bf16.msra.mxu1 (!%p197_p6), %v1757_v3 }
  0x10   : > { %1774 = vmatprep.subr.bf16.mxu1 (!%p197_p6), %v1761_v6 }
  0x12   : > { %s233_s13 = scalar_select %p232_p7, %s2084_s29, 124 }
  0x13   : > { %1778 = vmatpush3.bf16.msra.mxu1 %v1761_v6  ;;  %s1146_s14 = ssub.s32 (%p2076_p4), 125, %s2084_s29  ;;  %s1567_s15 = sshll.u32 (%p2076_p4), %s2064_s21, 8 }
  0x14   : > { %s1483_s20 = sshll.u32 %s233_s13, 3  ;;  %1775 = vmatprep.subr.bf16.mxu1 %v1765_v12  ;;  %s1481_s13 = sshll.u32 %s224_s12, 8 }
  0x15   : > { %s2109_s27 = scalar_lea.vmem %s2493_s0, %s1483_s20  ;;  %s2266_s18 = scalar_lea.vmem [#allocation2], %s1481_s13  }
  0x16   : > { %v246_v9 = vld [vmem:[%s2109_s27] sm:$0xff]  ;;  %v247_v10 = vld [vmem:[%s2109_s27 + $0x8] sm:$0xff]  ;;  %v248_v11 = vld [vmem:[%s2109_s27 + $0x10] sm:$0xff]  ;;  %p1147_p8 = scmp.lt.s32.totalorder (%p2076_p4), %s1146_s14, 32  ;;  %s2361_s20 = scalar_lea.vmem (%p2076_p4), %s2498_s5, %s1567_s15  }
  0x17   : > { %1645 = vmatprep.mubr.msk.f32.mxu0 %vm286_vm0, %v246_v9  ;;  %v249_v13 = vld [vmem:[%s2109_s27 + $0x18] sm:$0xff]  ;;  %v250_v14 = vld [vmem:[%s2109_s27 + $0x20] sm:$0xff]  ;;  %1779 = vmatpush3.bf16.msra.mxu1 %v1765_v12  ;;  %v251_v15 = vld [vmem:[%s2109_s27 + $0x28] sm:$0xff] }
  0x18   : > { %1646 = vmatmul.mubr.msk.f32.vlgmr.msra.gmra.mrb[0].mxu0 %vm286_vm0, %v247_v10  ;;  %v252_v16 = vld [vmem:[%s2109_s27 + $0x30] sm:$0xff]  ;;  %v253_v17 = vld [vmem:[%s2109_s27 + $0x38] sm:$0xff]  ;;  %v254_v18 = vld [vmem:[%s2109_s27 + $0x40] sm:$0xff]  ;;  %1776 = vmatprep.subr.bf16.mxu1 %v1769_v44 }
  0x19   : > { %1648 = vmatprep.mubr.msk.f32.mxu0 %vm286_vm0, %v248_v11  ;;  %1760 = vmatpush3.bf16.msra.mxu0 %v1757_v3  ;;  %v255_v19 = vld [vmem:[%s2109_s27 + $0x48] sm:$0xff]  ;;  %v256_v20 = vld [vmem:[%s2109_s27 + $0x50] sm:$0xff]  ;;  %v257_v21 = vld [vmem:[%s2109_s27 + $0x58] sm:$0xff] }
  0x1a   : > { %1762 = vmatprep.subr.bf16.mxu0 %v1761_v6  ;;  %v258_v22 = vld [vmem:[%s2109_s27 + $0x60] sm:$0xff]  ;;  %v259_v23 = vld [vmem:[%s2109_s27 + $0x68] sm:$0xff]  ;;  %v260_v24 = vld [vmem:[%s2109_s27 + $0x70] sm:$0xff] }
  0x1b   : > { %v261_v25 = vld [vmem:[%s2109_s27 + $0x78] sm:$0xff]  ;;  %v262_v26 = vld [vmem:[%s2109_s27 + $0x80] sm:$0xff]  ;;  %v263_v27 = vld [vmem:[%s2109_s27 + $0x88] sm:$0xff]  ;;  %1780 = vmatpush3.bf16.msra.mxu1 %v1769_v44 }
  0x1c   : > { %1649 = vmatmul.mubr.msk.f32.gmra.mrb[2].mxu0 %vm286_vm0, %v249_v13  ;;  %v264_v28 = vld [vmem:[%s2109_s27 + $0x90] sm:$0xff]  ;;  %v265_v29 = vld [vmem:[%s2109_s27 + $0x98] sm:$0xff]  ;;  %v266_v30 = vld [vmem:[%s2109_s27 + $0xa0] sm:$0xff] }
  0x1d   : > { %1651 = vmatprep.mubr.msk.f32.mxu0 %vm286_vm0, %v250_v14  ;;  %1764 = vmatpush3.bf16.msra.mxu0 %v1761_v6  ;;  %v267_v31 = vld [vmem:[%s2109_s27 + $0xa8] sm:$0xff]  ;;  %v268_v32 = vld [vmem:[%s2109_s27 + $0xb0] sm:$0xff]  ;;  %v269_v33 = vld [vmem:[%s2109_s27 + $0xb8] sm:$0xff] }
  0x1e   : > { %1766 = vmatprep.subr.bf16.mxu0 %v1765_v12  ;;  %v270_v34 = vld [vmem:[%s2109_s27 + $0xc0] sm:$0xff]  ;;  %v271_v35 = vld [vmem:[%s2109_s27 + $0xc8] sm:$0xff]  ;;  %v272_v36 = vld [vmem:[%s2109_s27 + $0xd0] sm:$0xff] }
  0x1f   : > { %v273_v37 = vld [vmem:[%s2109_s27 + $0xd8] sm:$0xff]  ;;  %v274_v38 = vld [vmem:[%s2109_s27 + $0xe0] sm:$0xff]  ;;  %v275_v39 = vld [vmem:[%s2109_s27 + $0xe8] sm:$0xff] }
  0x20   : > { %1652 = vmatmul.mubr.msk.f32.gmra.mrb[4].mxu0 %vm286_vm0, %v251_v15  ;;  %v276_v40 = vld [vmem:[%s2109_s27 + $0xf0] sm:$0xff]  ;;  %v277_v41 = vld [vmem:[%s2109_s27 + $0xf8] sm:$0xff] }
  0x21   : > { %1654 = vmatprep.mubr.msk.f32.mxu0 %vm286_vm0, %v252_v16  ;;  %1768 = vmatpush3.bf16.msra.mxu0 %v1765_v12 }
  0x22   : > { %1770 = vmatprep.subr.bf16.mxu0 %v1769_v44 }
  0x24   : > { %1655 = vmatmul.mubr.msk.f32.gmra.mrb[6].mxu0 %vm286_vm0, %v253_v17 }
  0x25   : > { %1657 = vmatprep.mubr.msk.f32.mxu0 %vm286_vm0, %v254_v18  ;;  %1772 = vmatpush3.bf16.msra.mxu0 %v1769_v44 }
  0x28   : > { %1658 = vmatmul.mubr.msk.f32.gmra.mrb[8].mxu0 %vm286_vm0, %v255_v19 }
  0x29   : > { %1660 = vmatprep.mubr.msk.f32.mxu0 %vm286_vm0, %v256_v20 }
  0x2c   : > { %1661 = vmatmul.mubr.msk.f32.gmra.mrb[10].mxu0 %vm286_vm0, %v257_v21 }
  0x2d   : > { %1663 = vmatprep.mubr.msk.f32.mxu0 %vm286_vm0, %v258_v22 }
  0x30   : > { %1664 = vmatmul.mubr.msk.f32.gmra.mrb[12].mxu0 %vm286_vm0, %v259_v23 }
  0x31   : > { %1666 = vmatprep.mubr.msk.f32.mxu0 %vm286_vm0, %v260_v24 }
  0x34   : > { %1667 = vmatmul.mubr.msk.f32.gmra.mrb[14].mxu0 %vm286_vm0, %v261_v25 }
  0x35   : > { %1669 = vmatprep.mubr.msk.f32.mxu0 %vm286_vm0, %v262_v26 }
  0x38   : > { %1670 = vmatmul.mubr.msk.f32.gmra.mrb[16].mxu0 %vm286_vm0, %v263_v27 }
  0x39   : > { %1672 = vmatprep.mubr.msk.f32.mxu0 %vm286_vm0, %v264_v28 }
  0x3c   : > { %1673 = vmatmul.mubr.msk.f32.gmra.mrb[18].mxu0 %vm286_vm0, %v265_v29 }
  0x3d   : > { %1675 = vmatprep.mubr.msk.f32.mxu0 %vm286_vm0, %v266_v30 }
  0x40   : > { %1676 = vmatmul.mubr.msk.f32.gmra.mrb[20].mxu0 %vm286_vm0, %v267_v31 }
  0x41   : > { %1678 = vmatprep.mubr.msk.f32.mxu0 %vm286_vm0, %v268_v32 }
  0x44   : > { %1679 = vmatmul.mubr.msk.f32.gmra.mrb[22].mxu0 %vm286_vm0, %v269_v33 }
  0x45   : > { %1681 = vmatprep.mubr.msk.f32.mxu0 %vm286_vm0, %v270_v34 }
  0x48   : > { %1682 = vmatmul.mubr.msk.f32.gmra.mrb[24].mxu0 %vm286_vm0, %v271_v35 }
  0x49   : > { %1684 = vmatprep.mubr.msk.f32.mxu0 %vm286_vm0, %v272_v36 }
  0x4c   : > { %1685 = vmatmul.mubr.msk.f32.gmra.mrb[26].mxu0 %vm286_vm0, %v273_v37 }
  0x4d   : > { %1687 = vmatprep.mubr.msk.f32.mxu0 %vm286_vm0, %v274_v38 }
  0x50   : > { %1688 = vmatmul.mubr.msk.f32.gmra.mrb[28].mxu0 %vm286_vm0, %v275_v39 }
  0x51   : > { %1690 = vmatprep.mubr.msk.f32.mxu0 %vm286_vm0, %v276_v40 }
  0x54   : > { %1691 = vmatmul.mubr.msk.f32.gmra.mrb[30].mxu0 %vm286_vm0, %v277_v41 }
  0xeb   : > { %v1647_v46 = vpop.f32.mrb[0].mxu0 }
  0xec   : > { %v455_v47 = vadd.f32 %v1647_v46, %v2184_v45  ;;  %v449_v48 = vpop.f32.mrb[1].mxu0 }
  0xed   : > { %v450_v49 = vadd.f32 %v2184_v45, %v449_v48 }
  0xee   : > { %v609_v52 = vmax.f32 %v455_v47, 0.0 }
  0xef   : > { %v608_v50 = vmax.f32 %v450_v49, 0.0  ;;  %v1650_v51 = vpop.f32.mrb[2].mxu0 }
  0xf0   : > { %v465_v53 = vadd.f32 %v1650_v51, %v2184_v45  ;;  %v459_v54 = vpop.f32.mrb[3].mxu0 }
  0xf1   : > { %v460_v55 = vadd.f32 %v2184_v45, %v459_v54  ;;  %1709 = vmatprep.mubr.msk.f32.mxu0 %vm655_vm1, %v608_v50 }
  0xf2   : > { %1710 = vmatmul.mubr.msk.f32.vlgmr.msra.gmra.mrb[32].mxu0 %vm655_vm1, %v609_v52  ;;  %v611_v58 = vmax.f32 %v465_v53, 0.0 }
  0xf3   : > { %v610_v56 = vmax.f32 %v460_v55, 0.0  ;;  %v1653_v57 = vpop.f32.mrb[4].mxu0 }
  0xf4   : > { %v475_v59 = vadd.f32 %v1653_v57, %v2184_v45  ;;  %v469_v60 = vpop.f32.mrb[5].mxu0 }
  0xf5   : > { %v470_v61 = vadd.f32 %v2184_v45, %v469_v60  ;;  %1712 = vmatprep.mubr.msk.f32.mxu1 %vm655_vm1, %v610_v56 }
  0xf6   : > { %1713 = vmatmul.mubr.msk.f32.vlgmr.msra.gmra.mrb[0].mxu1 %vm655_vm1, %v611_v58  ;;  %v613_v0 = vmax.f32 %v475_v59, 0.0 }
  0xf7   : > { %v612_v62 = vmax.f32 %v470_v61, 0.0  ;;  %v1656_v63 = vpop.f32.mrb[6].mxu0 }
  0xf8   : > { %v485_v1 = vadd.f32 %v1656_v63, %v2184_v45  ;;  %v479_v2 = vpop.f32.mrb[7].mxu0 }
  0xf9   : > { %v480_v3 = vadd.f32 %v2184_v45, %v479_v2  ;;  %1715 = vmatprep.mubr.msk.f32.mxu1 %vm655_vm1, %v612_v62 }
  0xfa   : > { %1716 = vmatmul.mubr.msk.f32.gmra.mrb[2].mxu1 %vm655_vm1, %v613_v0  ;;  %v615_v6 = vmax.f32 %v485_v1, 0.0 }
  0xfb   : > { %v614_v4 = vmax.f32 %v480_v3, 0.0  ;;  %v1659_v5 = vpop.f32.mrb[8].mxu0 }
  0xfc   : > { %v495_v7 = vadd.f32 %v1659_v5, %v2184_v45  ;;  %v489_v8 = vpop.f32.mrb[9].mxu0 }
  0xfd   : > { %v490_v9 = vadd.f32 %v2184_v45, %v489_v8  ;;  %1718 = vmatprep.mubr.msk.f32.mxu1 %vm655_vm1, %v614_v4 }
  0xfe   : > { %1719 = vmatmul.mubr.msk.f32.gmra.mrb[4].mxu1 %vm655_vm1, %v615_v6  ;;  %v617_v12 = vmax.f32 %v495_v7, 0.0 }
  0xff   : > { %v616_v10 = vmax.f32 %v490_v9, 0.0  ;;  %v1662_v11 = vpop.f32.mrb[10].mxu0 }
 0x100   : > { %v505_v13 = vadd.f32 %v1662_v11, %v2184_v45  ;;  %v499_v14 = vpop.f32.mrb[11].mxu0 }
 0x101   : > { %v500_v15 = vadd.f32 %v2184_v45, %v499_v14  ;;  %1721 = vmatprep.mubr.msk.f32.mxu1 %vm655_vm1, %v616_v10 }
 0x102   : > { %1722 = vmatmul.mubr.msk.f32.gmra.mrb[6].mxu1 %vm655_vm1, %v617_v12  ;;  %v619_v18 = vmax.f32 %v505_v13, 0.0 }
 0x103   : > { %v618_v16 = vmax.f32 %v500_v15, 0.0  ;;  %v1665_v17 = vpop.f32.mrb[12].mxu0  ;;  %v2253_v15 = vld [vmem:[%s2497_s4] ss:$0 sm:$0xff] }
 0x104   : > { %v515_v19 = vadd.f32 %v1665_v17, %v2184_v45  ;;  %v509_v20 = vpop.f32.mrb[13].mxu0 }
 0x105   : > { %v510_v21 = vadd.f32 %v2184_v45, %v509_v20  ;;  %1724 = vmatprep.mubr.msk.f32.mxu1 %vm655_vm1, %v618_v16 }
 0x106   : > { %1725 = vmatmul.mubr.msk.f32.gmra.mrb[8].mxu1 %vm655_vm1, %v619_v18  ;;  %v621_v24 = vmax.f32 %v515_v19, 0.0 }
 0x107   : > { %v620_v22 = vmax.f32 %v510_v21, 0.0  ;;  %v1668_v23 = vpop.f32.mrb[14].mxu0 }
 0x108   : > { %v525_v25 = vadd.f32 %v1668_v23, %v2184_v45  ;;  %v519_v26 = vpop.f32.mrb[15].mxu0 }
 0x109   : > { %v520_v27 = vadd.f32 %v2184_v45, %v519_v26  ;;  %1727 = vmatprep.mubr.msk.f32.mxu1 %vm655_vm1, %v620_v22 }
 0x10a   : > { %1728 = vmatmul.mubr.msk.f32.gmra.mrb[10].mxu1 %vm655_vm1, %v621_v24  ;;  %v623_v30 = vmax.f32 %v525_v25, 0.0 }
 0x10b   : > { %v622_v28 = vmax.f32 %v520_v27, 0.0  ;;  %v1671_v29 = vpop.f32.mrb[16].mxu0 }
 0x10c   : > { %v535_v31 = vadd.f32 %v1671_v29, %v2184_v45  ;;  %v529_v32 = vpop.f32.mrb[17].mxu0 }
 0x10d   : > { %v530_v33 = vadd.f32 %v2184_v45, %v529_v32  ;;  %1730 = vmatprep.mubr.msk.f32.mxu1 %vm655_vm1, %v622_v28 }
 0x10e   : > { %1731 = vmatmul.mubr.msk.f32.gmra.mrb[12].mxu1 %vm655_vm1, %v623_v30  ;;  %v625_v36 = vmax.f32 %v535_v31, 0.0 }
 0x10f   : > { %v624_v34 = vmax.f32 %v530_v33, 0.0  ;;  %v1674_v35 = vpop.f32.mrb[18].mxu0 }
 0x110   : > { %v545_v37 = vadd.f32 %v1674_v35, %v2184_v45  ;;  %v539_v38 = vpop.f32.mrb[19].mxu0 }
 0x111   : > { %v540_v39 = vadd.f32 %v2184_v45, %v539_v38  ;;  %1733 = vmatprep.mubr.msk.f32.mxu1 %vm655_vm1, %v624_v34 }
 0x112   : > { %1734 = vmatmul.mubr.msk.f32.gmra.mrb[14].mxu1 %vm655_vm1, %v625_v36  ;;  %v627_v42 = vmax.f32 %v545_v37, 0.0 }
 0x113   : > { %v626_v40 = vmax.f32 %v540_v39, 0.0  ;;  %v1677_v41 = vpop.f32.mrb[20].mxu0 }
 0x114   : > { %v555_v43 = vadd.f32 %v1677_v41, %v2184_v45  ;;  %v549_v44 = vpop.f32.mrb[21].mxu0 }
 0x115   : > { %v550_v46 = vadd.f32 %v2184_v45, %v549_v44  ;;  %1736 = vmatprep.mubr.msk.f32.mxu1 %vm655_vm1, %v626_v40 }
 0x116   : > { %1737 = vmatmul.mubr.msk.f32.gmra.mrb[16].mxu1 %vm655_vm1, %v627_v42  ;;  %v629_v49 = vmax.f32 %v555_v43, 0.0 }
 0x117   : > { %v628_v47 = vmax.f32 %v550_v46, 0.0  ;;  %v1680_v48 = vpop.f32.mrb[22].mxu0 }
 0x118   : > { %v565_v50 = vadd.f32 %v1680_v48, %v2184_v45  ;;  %v559_v51 = vpop.f32.mrb[23].mxu0 }
 0x119   : > { %v560_v52 = vadd.f32 %v2184_v45, %v559_v51  ;;  %1739 = vmatprep.mubr.msk.f32.mxu1 %vm655_vm1, %v628_v47 }
 0x11a   : > { %1740 = vmatmul.mubr.msk.f32.gmra.mrb[18].mxu1 %vm655_vm1, %v629_v49  ;;  %v631_v55 = vmax.f32 %v565_v50, 0.0 }
 0x11b   : > { %v630_v53 = vmax.f32 %v560_v52, 0.0  ;;  %v1683_v54 = vpop.f32.mrb[24].mxu0 }
 0x11c   : > { %v575_v56 = vadd.f32 %v1683_v54, %v2184_v45  ;;  %v569_v57 = vpop.f32.mrb[25].mxu0 }
 0x11d   : > { %v570_v58 = vadd.f32 %v2184_v45, %v569_v57  ;;  %1742 = vmatprep.mubr.msk.f32.mxu1 %vm655_vm1, %v630_v53 }
 0x11e   : > { %1743 = vmatmul.mubr.msk.f32.gmra.mrb[20].mxu1 %vm655_vm1, %v631_v55  ;;  %v633_v61 = vmax.f32 %v575_v56, 0.0 }
 0x11f   : > { %v632_v59 = vmax.f32 %v570_v58, 0.0  ;;  %v1686_v60 = vpop.f32.mrb[26].mxu0 }
 0x120   : > { %v585_v62 = vadd.f32 %v1686_v60, %v2184_v45  ;;  %v579_v63 = vpop.f32.mrb[27].mxu0 }
 0x121   : > { %v580_v0 = vadd.f32 %v2184_v45, %v579_v63  ;;  %1745 = vmatprep.mubr.msk.f32.mxu1 %vm655_vm1, %v632_v59 }
 0x122   : > { %1746 = vmatmul.mubr.msk.f32.gmra.mrb[22].mxu1 %vm655_vm1, %v633_v61  ;;  %v635_v3 = vmax.f32 %v585_v62, 0.0 }
 0x123   : > { %v634_v1 = vmax.f32 %v580_v0, 0.0  ;;  %v1689_v2 = vpop.f32.mrb[28].mxu0 }
 0x124   : > { %v595_v4 = vadd.f32 %v1689_v2, %v2184_v45  ;;  %v589_v5 = vpop.f32.mrb[29].mxu0 }
 0x125   : > { %v590_v6 = vadd.f32 %v2184_v45, %v589_v5  ;;  %1748 = vmatprep.mubr.msk.f32.mxu1 %vm655_vm1, %v634_v1 }
 0x126   : > { %1749 = vmatmul.mubr.msk.f32.gmra.mrb[24].mxu1 %vm655_vm1, %v635_v3  ;;  %v637_v9 = vmax.f32 %v595_v4, 0.0 }
 0x127   : > { %v636_v7 = vmax.f32 %v590_v6, 0.0  ;;  %v1692_v8 = vpop.f32.mrb[30].mxu0 }
 0x128   : > { %v605_v10 = vadd.f32 %v1692_v8, %v2184_v45  ;;  %v599_v11 = vpop.f32.mrb[31].mxu0 }
 0x129   : > { %v600_v12 = vadd.f32 %v2184_v45, %v599_v11  ;;  %1751 = vmatprep.mubr.msk.f32.mxu1 %vm655_vm1, %v636_v7 }
 0x12a   : > { %1752 = vmatmul.mubr.msk.f32.gmra.mrb[26].mxu1 %vm655_vm1, %v637_v9  ;;  %v639_v14 = vmax.f32 %v605_v10, 0.0 }
 0x12b   : > { %v638_v13 = vmax.f32 %v600_v12, 0.0 }
 0x12d   : > { %1754 = vmatprep.mubr.msk.f32.mxu1 %vm655_vm1, %v638_v13 }
 0x12e   : > { %1755 = vmatmul.mubr.msk.f32.gmra.mrb[28].mxu1 %vm655_vm1, %v639_v14 }
 0x1c5   : > { %v1711_v16 = vpop.f32.mrb[32].mxu0 }
 0x1c6   : > { %v824_v17 = vadd.f32 %v1711_v16, %v2253_v15  ;;  %v818_v18 = vpop.f32.mrb[33].mxu0 }
 0x1c7   : > { %v819_v45 = vadd.f32 %v2253_v15, %v818_v18 }
 0x1c8   : > { %v978_v19 = vsub.f32 0.0, %v824_v17 }
 0x1c9   : > { %v977_v20 = vsub.f32 0.0, %v819_v45  ;;  %v1714_v21 = vpop.f32.mrb[0].mxu1 }
 0x1ca   : > { %v1011_v22 = vmul.f32 1.442695, %v978_v19  ;;  %v834_v23 = vadd.f32 %v1714_v21, %v2253_v15  ;;  %v828_v24 = vpop.f32.mrb[1].mxu1 }
 0x1cb   : > { %v1009_v25 = vmul.f32 1.442695, %v977_v20  ;;  %v829_v26 = vadd.f32 %v2253_v15, %v828_v24 }
 0x1cc   : > { %1869 = vpow2.f32 %v1011_v22  ;;  %v980_v27 = vsub.f32 0.0, %v834_v23 }
 0x1cd   : > { %1871 = vpow2.f32 %v1009_v25  ;;  %v979_v28 = vsub.f32 0.0, %v829_v26  ;;  %v1717_v29 = vpop.f32.mrb[2].mxu1 }
 0x1ce   : > { %v1015_v30 = vmul.f32 1.442695, %v980_v27  ;;  %v844_v31 = vadd.f32 %v1717_v29, %v2253_v15  ;;  %v838_v32 = vpop.f32.mrb[3].mxu1 }
 0x1cf   : > { %v1013_v33 = vmul.f32 1.442695, %v979_v28  ;;  %v839_v34 = vadd.f32 %v2253_v15, %v838_v32 }
 0x1d0   : > { %1873 = vpow2.f32 %v1015_v30  ;;  %v982_v35 = vsub.f32 0.0, %v844_v31 }
 0x1d1   : > { %1875 = vpow2.f32 %v1013_v33  ;;  %v981_v36 = vsub.f32 0.0, %v839_v34  ;;  %v1720_v37 = vpop.f32.mrb[4].mxu1 }
 0x1d2   : > { %v1019_v38 = vmul.f32 1.442695, %v982_v35  ;;  %v854_v39 = vadd.f32 %v1720_v37, %v2253_v15  ;;  %v848_v40 = vpop.f32.mrb[5].mxu1 }
 0x1d3   : > { %v1017_v41 = vmul.f32 1.442695, %v981_v36  ;;  %v849_v42 = vadd.f32 %v2253_v15, %v848_v40 }
 0x1d4   : > { %1877 = vpow2.f32 %v1019_v38  ;;  %v984_v43 = vsub.f32 0.0, %v854_v39 }
 0x1d5   : > { %1879 = vpow2.f32 %v1017_v41  ;;  %v983_v44 = vsub.f32 0.0, %v849_v42  ;;  %v1723_v46 = vpop.f32.mrb[6].mxu1 }
 0x1d6   : > { %v1870_v47 = vpop.eup %1869  ;;  %v1023_v48 = vmul.f32 1.442695, %v984_v43  ;;  %v864_v49 = vadd.f32 %v1723_v46, %v2253_v15  ;;  %v858_v50 = vpop.f32.mrb[7].mxu1 }
 0x1d7   : > { %v1872_v51 = vpop.eup %1871  ;;  %v1074_v52 = vsub.f32 0.0, %v1870_v47  ;;  %v1021_v53 = vmul.f32 1.442695, %v983_v44  ;;  %v859_v54 = vadd.f32 %v2253_v15, %v858_v50 }
 0x1d8   : > { %v1073_v55 = vsub.f32 0.0, %v1872_v51  ;;  %1881 = vpow2.f32 %v1023_v48  ;;  %v986_v56 = vsub.f32 0.0, %v864_v49 }
 0x1d9   : > { %1107 = vst.msk [vmem:[%s2266_s18 + $0x8] sm:$0xff] %vm1105_vm2, %v1074_v52  ;;  %1883 = vpow2.f32 %v1021_v53  ;;  %v985_v57 = vsub.f32 0.0, %v859_v54  ;;  %v1726_v58 = vpop.f32.mrb[8].mxu1 }
 0x1da   : > { %v1874_v59 = vpop.eup %1873  ;;  %1106 = vst.msk [vmem:[%s2266_s18] sm:$0xff] %vm1105_vm2, %v1073_v55  ;;  %v1027_v60 = vmul.f32 1.442695, %v986_v56  ;;  %v874_v61 = vadd.f32 %v1726_v58, %v2253_v15  ;;  %v868_v62 = vpop.f32.mrb[9].mxu1 }
 0x1db   : > { %v1876_v63 = vpop.eup %1875  ;;  %v1076_v0 = vsub.f32 0.0, %v1874_v59  ;;  %v1025_v1 = vmul.f32 1.442695, %v985_v57  ;;  %v869_v2 = vadd.f32 %v2253_v15, %v868_v62 }
 0x1dc   : > { %v1075_v3 = vsub.f32 0.0, %v1876_v63  ;;  %1885 = vpow2.f32 %v1027_v60  ;;  %v988_v4 = vsub.f32 0.0, %v874_v61 }
 0x1dd   : > { %1109 = vst.msk [vmem:[%s2266_s18 + $0x18] sm:$0xff] %vm1105_vm2, %v1076_v0  ;;  %1887 = vpow2.f32 %v1025_v1  ;;  %v987_v5 = vsub.f32 0.0, %v869_v2  ;;  %v1729_v6 = vpop.f32.mrb[10].mxu1 }
 0x1de   : > { %v1878_v7 = vpop.eup %1877  ;;  %1108 = vst.msk [vmem:[%s2266_s18 + $0x10] sm:$0xff] %vm1105_vm2, %v1075_v3  ;;  %v1031_v8 = vmul.f32 1.442695, %v988_v4  ;;  %v884_v9 = vadd.f32 %v1729_v6, %v2253_v15  ;;  %v878_v10 = vpop.f32.mrb[11].mxu1 }
 0x1df   : > { %v1880_v11 = vpop.eup %1879  ;;  %v1078_v12 = vsub.f32 0.0, %v1878_v7  ;;  %v1029_v13 = vmul.f32 1.442695, %v987_v5  ;;  %v879_v14 = vadd.f32 %v2253_v15, %v878_v10 }
 0x1e0   : > { %v1077_v16 = vsub.f32 0.0, %v1880_v11  ;;  %1889 = vpow2.f32 %v1031_v8  ;;  %v990_v17 = vsub.f32 0.0, %v884_v9 }
 0x1e1   : > { %1111 = vst.msk [vmem:[%s2266_s18 + $0x28] sm:$0xff] %vm1105_vm2, %v1078_v12  ;;  %1891 = vpow2.f32 %v1029_v13  ;;  %v989_v18 = vsub.f32 0.0, %v879_v14  ;;  %v1732_v45 = vpop.f32.mrb[12].mxu1 }
 0x1e2   : > { %v1882_v19 = vpop.eup %1881  ;;  %1110 = vst.msk [vmem:[%s2266_s18 + $0x20] sm:$0xff] %vm1105_vm2, %v1077_v16  ;;  %v1035_v20 = vmul.f32 1.442695, %v990_v17  ;;  %v894_v21 = vadd.f32 %v1732_v45, %v2253_v15  ;;  %v888_v22 = vpop.f32.mrb[13].mxu1 }
 0x1e3   : > { %v1884_v23 = vpop.eup %1883  ;;  %v1080_v24 = vsub.f32 0.0, %v1882_v19  ;;  %v1033_v25 = vmul.f32 1.442695, %v989_v18  ;;  %v889_v26 = vadd.f32 %v2253_v15, %v888_v22 }
 0x1e4   : > { %v1079_v27 = vsub.f32 0.0, %v1884_v23  ;;  %1893 = vpow2.f32 %v1035_v20  ;;  %v992_v28 = vsub.f32 0.0, %v894_v21 }
 0x1e5   : > { %1113 = vst.msk [vmem:[%s2266_s18 + $0x38] sm:$0xff] %vm1105_vm2, %v1080_v24  ;;  %1895 = vpow2.f32 %v1033_v25  ;;  %v991_v29 = vsub.f32 0.0, %v889_v26  ;;  %v1735_v30 = vpop.f32.mrb[14].mxu1 }
 0x1e6   : > { %v1886_v31 = vpop.eup %1885  ;;  %1112 = vst.msk [vmem:[%s2266_s18 + $0x30] sm:$0xff] %vm1105_vm2, %v1079_v27  ;;  %v1039_v32 = vmul.f32 1.442695, %v992_v28  ;;  %v904_v33 = vadd.f32 %v1735_v30, %v2253_v15  ;;  %v898_v34 = vpop.f32.mrb[15].mxu1 }
 0x1e7   : > { %v1888_v35 = vpop.eup %1887  ;;  %v1082_v36 = vsub.f32 0.0, %v1886_v31  ;;  %v1037_v37 = vmul.f32 1.442695, %v991_v29  ;;  %v899_v38 = vadd.f32 %v2253_v15, %v898_v34 }
 0x1e8   : > { %v1081_v39 = vsub.f32 0.0, %v1888_v35  ;;  %1897 = vpow2.f32 %v1039_v32  ;;  %v994_v40 = vsub.f32 0.0, %v904_v33 }
 0x1e9   : > { %1115 = vst.msk [vmem:[%s2266_s18 + $0x48] sm:$0xff] %vm1105_vm2, %v1082_v36  ;;  %1899 = vpow2.f32 %v1037_v37  ;;  %v993_v41 = vsub.f32 0.0, %v899_v38  ;;  %v1738_v42 = vpop.f32.mrb[16].mxu1 }
 0x1ea   : > { %v1890_v43 = vpop.eup %1889  ;;  %1114 = vst.msk [vmem:[%s2266_s18 + $0x40] sm:$0xff] %vm1105_vm2, %v1081_v39  ;;  %v1043_v44 = vmul.f32 1.442695, %v994_v40  ;;  %v914_v46 = vadd.f32 %v1738_v42, %v2253_v15  ;;  %v908_v47 = vpop.f32.mrb[17].mxu1 }
 0x1eb   : > { %v1892_v48 = vpop.eup %1891  ;;  %v1084_v49 = vsub.f32 0.0, %v1890_v43  ;;  %v1041_v50 = vmul.f32 1.442695, %v993_v41  ;;  %v909_v51 = vadd.f32 %v2253_v15, %v908_v47 }
 0x1ec   : > { %v1083_v52 = vsub.f32 0.0, %v1892_v48  ;;  %1901 = vpow2.f32 %v1043_v44  ;;  %v996_v53 = vsub.f32 0.0, %v914_v46 }
 0x1ed   : > { %1117 = vst.msk [vmem:[%s2266_s18 + $0x58] sm:$0xff] %vm1105_vm2, %v1084_v49  ;;  %1903 = vpow2.f32 %v1041_v50  ;;  %v995_v54 = vsub.f32 0.0, %v909_v51  ;;  %v1741_v55 = vpop.f32.mrb[18].mxu1 }
 0x1ee   : > { %v1894_v56 = vpop.eup %1893  ;;  %1116 = vst.msk [vmem:[%s2266_s18 + $0x50] sm:$0xff] %vm1105_vm2, %v1083_v52  ;;  %v1047_v57 = vmul.f32 1.442695, %v996_v53  ;;  %v924_v58 = vadd.f32 %v1741_v55, %v2253_v15  ;;  %v918_v59 = vpop.f32.mrb[19].mxu1 }
 0x1ef   : > { %v1896_v60 = vpop.eup %1895  ;;  %v1086_v61 = vsub.f32 0.0, %v1894_v56  ;;  %v1045_v62 = vmul.f32 1.442695, %v995_v54  ;;  %v919_v63 = vadd.f32 %v2253_v15, %v918_v59 }
 0x1f0   : > { %v1085_v0 = vsub.f32 0.0, %v1896_v60  ;;  %1905 = vpow2.f32 %v1047_v57  ;;  %v998_v1 = vsub.f32 0.0, %v924_v58 }
 0x1f1   : > { %1119 = vst.msk [vmem:[%s2266_s18 + $0x68] sm:$0xff] %vm1105_vm2, %v1086_v61  ;;  %1907 = vpow2.f32 %v1045_v62  ;;  %v997_v2 = vsub.f32 0.0, %v919_v63  ;;  %v1744_v3 = vpop.f32.mrb[20].mxu1 }
 0x1f2   : > { %v1898_v4 = vpop.eup %1897  ;;  %1118 = vst.msk [vmem:[%s2266_s18 + $0x60] sm:$0xff] %vm1105_vm2, %v1085_v0  ;;  %v1051_v5 = vmul.f32 1.442695, %v998_v1  ;;  %v934_v6 = vadd.f32 %v1744_v3, %v2253_v15  ;;  %v928_v7 = vpop.f32.mrb[21].mxu1 }
 0x1f3   : > { %v1900_v8 = vpop.eup %1899  ;;  %v1088_v9 = vsub.f32 0.0, %v1898_v4  ;;  %v1049_v10 = vmul.f32 1.442695, %v997_v2  ;;  %v929_v11 = vadd.f32 %v2253_v15, %v928_v7 }
 0x1f4   : > { %v1087_v12 = vsub.f32 0.0, %v1900_v8  ;;  %1909 = vpow2.f32 %v1051_v5  ;;  %v1000_v13 = vsub.f32 0.0, %v934_v6 }
 0x1f5   : > { %1121 = vst.msk [vmem:[%s2266_s18 + $0x78] sm:$0xff] %vm1105_vm2, %v1088_v9  ;;  %1911 = vpow2.f32 %v1049_v10  ;;  %v999_v14 = vsub.f32 0.0, %v929_v11  ;;  %v1747_v16 = vpop.f32.mrb[22].mxu1 }
 0x1f6   : > { %v1902_v17 = vpop.eup %1901  ;;  %1120 = vst.msk [vmem:[%s2266_s18 + $0x70] sm:$0xff] %vm1105_vm2, %v1087_v12  ;;  %v1055_v18 = vmul.f32 1.442695, %v1000_v13  ;;  %v944_v45 = vadd.f32 %v1747_v16, %v2253_v15  ;;  %v938_v19 = vpop.f32.mrb[23].mxu1 }
 0x1f7   : > { %v1904_v20 = vpop.eup %1903  ;;  %v1090_v21 = vsub.f32 0.0, %v1902_v17  ;;  %v1053_v22 = vmul.f32 1.442695, %v999_v14  ;;  %v939_v23 = vadd.f32 %v2253_v15, %v938_v19 }
 0x1f8   : > { %v1089_v24 = vsub.f32 0.0, %v1904_v20  ;;  %1913 = vpow2.f32 %v1055_v18  ;;  %v1002_v25 = vsub.f32 0.0, %v944_v45 }
 0x1f9   : > { %1123 = vst.msk [vmem:[%s2266_s18 + $0x88] sm:$0xff] %vm1105_vm2, %v1090_v21  ;;  %1915 = vpow2.f32 %v1053_v22  ;;  %v1001_v26 = vsub.f32 0.0, %v939_v23  ;;  %v1750_v27 = vpop.f32.mrb[24].mxu1 }
 0x1fa   : > { %v1906_v28 = vpop.eup %1905  ;;  %1122 = vst.msk [vmem:[%s2266_s18 + $0x80] sm:$0xff] %vm1105_vm2, %v1089_v24  ;;  %v1059_v29 = vmul.f32 1.442695, %v1002_v25  ;;  %v954_v30 = vadd.f32 %v1750_v27, %v2253_v15  ;;  %v948_v31 = vpop.f32.mrb[25].mxu1 }
 0x1fb   : > { %v1908_v32 = vpop.eup %1907  ;;  %v1092_v33 = vsub.f32 0.0, %v1906_v28  ;;  %v1057_v34 = vmul.f32 1.442695, %v1001_v26  ;;  %v949_v35 = vadd.f32 %v2253_v15, %v948_v31 }
 0x1fc   : > { %v1091_v36 = vsub.f32 0.0, %v1908_v32  ;;  %1917 = vpow2.f32 %v1059_v29  ;;  %v1004_v37 = vsub.f32 0.0, %v954_v30 }
 0x1fd   : > { %1125 = vst.msk [vmem:[%s2266_s18 + $0x98] sm:$0xff] %vm1105_vm2, %v1092_v33  ;;  %1919 = vpow2.f32 %v1057_v34  ;;  %v1003_v38 = vsub.f32 0.0, %v949_v35  ;;  %v1753_v39 = vpop.f32.mrb[26].mxu1 }
 0x1fe   : > { %v1910_v40 = vpop.eup %1909  ;;  %1124 = vst.msk [vmem:[%s2266_s18 + $0x90] sm:$0xff] %vm1105_vm2, %v1091_v36  ;;  %v1063_v41 = vmul.f32 1.442695, %v1004_v37  ;;  %v964_v42 = vadd.f32 %v1753_v39, %v2253_v15  ;;  %v958_v43 = vpop.f32.mrb[27].mxu1 }
 0x1ff   : > { %v1912_v44 = vpop.eup %1911  ;;  %v1094_v46 = vsub.f32 0.0, %v1910_v40  ;;  %v1061_v47 = vmul.f32 1.442695, %v1003_v38  ;;  %v959_v48 = vadd.f32 %v2253_v15, %v958_v43 }
 0x200   : > { %v1093_v49 = vsub.f32 0.0, %v1912_v44  ;;  %1921 = vpow2.f32 %v1063_v41  ;;  %v1006_v50 = vsub.f32 0.0, %v964_v42 }
 0x201   : > { %1127 = vst.msk [vmem:[%s2266_s18 + $0xa8] sm:$0xff] %vm1105_vm2, %v1094_v46  ;;  %1923 = vpow2.f32 %v1061_v47  ;;  %v1005_v51 = vsub.f32 0.0, %v959_v48  ;;  %v1756_v52 = vpop.f32.mrb[28].mxu1 }
 0x202   : > { %v1914_v53 = vpop.eup %1913  ;;  %1126 = vst.msk [vmem:[%s2266_s18 + $0xa0] sm:$0xff] %vm1105_vm2, %v1093_v49  ;;  %v1067_v54 = vmul.f32 1.442695, %v1006_v50  ;;  %v974_v55 = vadd.f32 %v1756_v52, %v2253_v15  ;;  %v968_v56 = vpop.f32.mrb[29].mxu1 }
 0x203   : > { %v1916_v57 = vpop.eup %1915  ;;  %v1096_v58 = vsub.f32 0.0, %v1914_v53  ;;  %v1065_v59 = vmul.f32 1.442695, %v1005_v51  ;;  %v969_v60 = vadd.f32 %v2253_v15, %v968_v56 }
 0x204   : > { %v1095_v61 = vsub.f32 0.0, %v1916_v57  ;;  %1925 = vpow2.f32 %v1067_v54  ;;  %v1008_v62 = vsub.f32 0.0, %v974_v55 }
 0x205   : > { %1129 = vst.msk [vmem:[%s2266_s18 + $0xb8] sm:$0xff] %vm1105_vm2, %v1096_v58  ;;  %1927 = vpow2.f32 %v1065_v59  ;;  %v1007_v63 = vsub.f32 0.0, %v969_v60 }
 0x206   : > { %v1918_v0 = vpop.eup %1917  ;;  %1128 = vst.msk [vmem:[%s2266_s18 + $0xb0] sm:$0xff] %vm1105_vm2, %v1095_v61  ;;  %v1071_v1 = vmul.f32 1.442695, %v1008_v62 }
 0x207   : > { %v1920_v2 = vpop.eup %1919  ;;  %v1098_v3 = vsub.f32 0.0, %v1918_v0  ;;  %v1069_v4 = vmul.f32 1.442695, %v1007_v63 }
 0x208   : > { %v1097_v5 = vsub.f32 0.0, %v1920_v2  ;;  %1929 = vpow2.f32 %v1071_v1 }
 0x209   : > { %1131 = vst.msk [vmem:[%s2266_s18 + $0xc8] sm:$0xff] %vm1105_vm2, %v1098_v3  ;;  %1931 = vpow2.f32 %v1069_v4 }
 0x20a   : > { %v1922_v15 = vpop.eup %1921  ;;  %1130 = vst.msk [vmem:[%s2266_s18 + $0xc0] sm:$0xff] %vm1105_vm2, %v1097_v5 }
 0x20b   : > { %v1924_v6 = vpop.eup %1923  ;;  %v1100_v7 = vsub.f32 0.0, %v1922_v15 }
 0x20c   : > { %v1099_v8 = vsub.f32 0.0, %v1924_v6 }
 0x20d   : > { %1133 = vst.msk [vmem:[%s2266_s18 + $0xd8] sm:$0xff] %vm1105_vm2, %v1100_v7 }
 0x20e   : > { %v1926_v9 = vpop.eup %1925  ;;  %1132 = vst.msk [vmem:[%s2266_s18 + $0xd0] sm:$0xff] %vm1105_vm2, %v1099_v8 }
 0x20f   : > { %v1928_v10 = vpop.eup %1927  ;;  %v1102_v11 = vsub.f32 0.0, %v1926_v9 }
 0x210   : > { %v1101_v12 = vsub.f32 0.0, %v1928_v10  ;;  %1144 = sbr.rel (!%p2076_p4) target bundleno = 591 (0x24f), region = 44 }
 0x211   : > { %1135 = vst.msk [vmem:[%s2266_s18 + $0xe8] sm:$0xff] %vm1105_vm2, %v1102_v11 }
 0x212   : > { %v1930_v13 = vpop.eup %1929  ;;  %1134 = vst.msk [vmem:[%s2266_s18 + $0xe0] sm:$0xff] %vm1105_vm2, %v1101_v12 }
 0x213   : > { %v1932_v14 = vpop.eup %1931  ;;  %v1104_v16 = vsub.f32 0.0, %v1930_v13 }
 0x214   : > { %v1103_v17 = vsub.f32 0.0, %v1932_v14 }
 0x215   : > { %1137 = vst.msk [vmem:[%s2266_s18 + $0xf8] sm:$0xff] %vm1105_vm2, %v1104_v16 }
 0x216   : > { %1136 = vst.msk [vmem:[%s2266_s18 + $0xf0] sm:$0xff] %vm1105_vm2, %v1103_v17 }
 0x217   : > { %s2509_s14 = smov (!%p1147_p8, %s1146_s14), 32 }
 0x218   : > { %s1552_s23 = sshll.u32 %s2509_s14, 7 }
 0x219   : > { %p1555_p9 = scmp.eq.s32.totalorder %s1552_s23, 0 }
 0x21a   : > { %s2367_s24 = sshrl.u32 (!%p1555_p9), %s2509_s14, 5 }
 0x21b   : > { %1155 = sbr.rel (%p1555_p9) target bundleno = 591 (0x24f), region = 48  ;;  %p1556_p10 = scmp.le.s32.totalorder (!%p1555_p9), %s2367_s24, 0 }
 0x222   : > { %1433 = sbr.rel (%p1556_p10) target bundleno = 570 (0x23a), region = 124  ;;  %s2500_s21 = smov (!%p1556_p10), %s2361_s20 }
 0x223   : > { %s2501_s26 = smov (!%p1556_p10), %s2266_s18  ;;  %s2376_s29 = smov (!%p1556_p10), 0  }
 0x224   : > { %s2378_s27 = smov (!%p1556_p10), 0  }
 0x229 LB: >> { %v1279_v18 = vld [vmem:[%s1995_s26] sm:$0xff]  ;;  %v1281_v45 = vld [vmem:[%s1995_s26 + $0x8] sm:$0xff]  ;;  %v1283_v19 = vld [vmem:[%s1995_s26 + $0x10] sm:$0xff]  ;;  %s1343_s28 = sadd.s32 1, %s1999_s29  ;;  %s1273_s27 = sadd.s32 1, %s2003_s27   ;;  %s2003_s27 = sphi %s2378_s27, %s1273_s27   ;;  %s1999_s29 = sphi %s2376_s29, %s2504_s29   ;;  %s1995_s26 = sphi %s2501_s26, %s2503_s26   ;;  %s1991_s21 = sphi %s2500_s21, %s2502_s21  }
 0x22a   : >> { %1280 = vst [vmem:[%s1991_s21] sm:$0xff] %v1279_v18  ;;  %1282 = vst [vmem:[%s1991_s21 + $0x8] sm:$0xff] %v1281_v45  ;;  %v1285_v20 = vld [vmem:[%s1995_s26 + $0x18] sm:$0xff]  ;;  %v1287_v21 = vld [vmem:[%s1995_s26 + $0x20] sm:$0xff]  ;;  %p1344_p11 = scmp.ge.s32.totalorder %s1343_s28, %s2367_s24  ;;  %p1272_p12 = scmp.ge.s32.totalorder %s1273_s27, %s2367_s24 }
 0x22b   : >> { %1284 = vst [vmem:[%s1991_s21 + $0x10] sm:$0xff] %v1283_v19  ;;  %v1289_v22 = vld [vmem:[%s1995_s26 + $0x28] sm:$0xff]  ;;  %1286 = vst [vmem:[%s1991_s21 + $0x18] sm:$0xff] %v1285_v20  ;;  %v1291_v23 = vld [vmem:[%s1995_s26 + $0x30] sm:$0xff] }
 0x22c   : >> { %1288 = vst [vmem:[%s1991_s21 + $0x20] sm:$0xff] %v1287_v21  ;;  %1290 = vst [vmem:[%s1991_s21 + $0x28] sm:$0xff] %v1289_v22  ;;  %v1293_v24 = vld [vmem:[%s1995_s26 + $0x38] sm:$0xff]  ;;  %v1295_v25 = vld [vmem:[%s1995_s26 + $0x40] sm:$0xff]  ;;  %s2511_s28 = smov (%p1344_p11, %s1343_s28), 0 }
 0x22d   : >> { %1292 = vst [vmem:[%s1991_s21 + $0x30] sm:$0xff] %v1291_v23  ;;  %1294 = vst [vmem:[%s1991_s21 + $0x38] sm:$0xff] %v1293_v24  ;;  %v1297_v26 = vld [vmem:[%s1995_s26 + $0x48] sm:$0xff]  ;;  %v1299_v27 = vld [vmem:[%s1995_s26 + $0x50] sm:$0xff]  ;;  %s1557_s30 = sshll.u32 %s2511_s28, 8  ;;  %s2504_s29 = smov %s2511_s28 }
 0x22e   : >> { %1296 = vst [vmem:[%s1991_s21 + $0x40] sm:$0xff] %v1295_v25  ;;  %v1301_v28 = vld [vmem:[%s1995_s26 + $0x58] sm:$0xff]  ;;  %1298 = vst [vmem:[%s1991_s21 + $0x48] sm:$0xff] %v1297_v26  ;;  %v1303_v29 = vld [vmem:[%s1995_s26 + $0x60] sm:$0xff]  ;;  %s2434_s6 = scalar_lea.vmem %s2266_s18, %s1557_s30 [#allocation2]   ;;  %s1349_s7 = scalar_lea.vmem %s2361_s20, %s1557_s30  }
 0x22f   : >> { %1300 = vst [vmem:[%s1991_s21 + $0x50] sm:$0xff] %v1299_v27  ;;  %1302 = vst [vmem:[%s1991_s21 + $0x58] sm:$0xff] %v1301_v28  ;;  %v1305_v30 = vld [vmem:[%s1995_s26 + $0x68] sm:$0xff]  ;;  %v1307_v31 = vld [vmem:[%s1995_s26 + $0x70] sm:$0xff] }
 0x230   : >> { %1304 = vst [vmem:[%s1991_s21 + $0x60] sm:$0xff] %v1303_v29  ;;  %1306 = vst [vmem:[%s1991_s21 + $0x68] sm:$0xff] %v1305_v30  ;;  %v1309_v32 = vld [vmem:[%s1995_s26 + $0x78] sm:$0xff]  ;;  %v1311_v33 = vld [vmem:[%s1995_s26 + $0x80] sm:$0xff] }
 0x231   : >> { %1308 = vst [vmem:[%s1991_s21 + $0x70] sm:$0xff] %v1307_v31  ;;  %v1313_v34 = vld [vmem:[%s1995_s26 + $0x88] sm:$0xff]  ;;  %1310 = vst [vmem:[%s1991_s21 + $0x78] sm:$0xff] %v1309_v32  ;;  %v1315_v35 = vld [vmem:[%s1995_s26 + $0x90] sm:$0xff] }
 0x232   : >> { %1312 = vst [vmem:[%s1991_s21 + $0x80] sm:$0xff] %v1311_v33  ;;  %1314 = vst [vmem:[%s1991_s21 + $0x88] sm:$0xff] %v1313_v34  ;;  %v1317_v36 = vld [vmem:[%s1995_s26 + $0x98] sm:$0xff]  ;;  %v1319_v37 = vld [vmem:[%s1995_s26 + $0xa0] sm:$0xff] }
 0x233   : >> { %1316 = vst [vmem:[%s1991_s21 + $0x90] sm:$0xff] %v1315_v35  ;;  %1318 = vst [vmem:[%s1991_s21 + $0x98] sm:$0xff] %v1317_v36  ;;  %v1321_v38 = vld [vmem:[%s1995_s26 + $0xa8] sm:$0xff]  ;;  %v1323_v39 = vld [vmem:[%s1995_s26 + $0xb0] sm:$0xff]  ;;  %1275 = sbr.rel (!%p1272_p12) target bundleno = 553 (0x229), region = 130 }
 0x234   : >> { %1320 = vst [vmem:[%s1991_s21 + $0xa0] sm:$0xff] %v1319_v37  ;;  %v1325_v40 = vld [vmem:[%s1995_s26 + $0xb8] sm:$0xff]  ;;  %1322 = vst [vmem:[%s1991_s21 + $0xa8] sm:$0xff] %v1321_v38  ;;  %v1327_v41 = vld [vmem:[%s1995_s26 + $0xc0] sm:$0xff] }
 0x235   : >> { %1324 = vst [vmem:[%s1991_s21 + $0xb0] sm:$0xff] %v1323_v39  ;;  %1326 = vst [vmem:[%s1991_s21 + $0xb8] sm:$0xff] %v1325_v40  ;;  %v1329_v42 = vld [vmem:[%s1995_s26 + $0xc8] sm:$0xff]  ;;  %v1331_v43 = vld [vmem:[%s1995_s26 + $0xd0] sm:$0xff] }
 0x236   : >> { %1328 = vst [vmem:[%s1991_s21 + $0xc0] sm:$0xff] %v1327_v41  ;;  %1330 = vst [vmem:[%s1991_s21 + $0xc8] sm:$0xff] %v1329_v42  ;;  %v1333_v44 = vld [vmem:[%s1995_s26 + $0xd8] sm:$0xff]  ;;  %v1335_v46 = vld [vmem:[%s1995_s26 + $0xe0] sm:$0xff] }
 0x237   : >> { %1332 = vst [vmem:[%s1991_s21 + $0xd0] sm:$0xff] %v1331_v43  ;;  %v1337_v47 = vld [vmem:[%s1995_s26 + $0xe8] sm:$0xff]  ;;  %1334 = vst [vmem:[%s1991_s21 + $0xd8] sm:$0xff] %v1333_v44  ;;  %v1339_v48 = vld [vmem:[%s1995_s26 + $0xf0] sm:$0xff] }
 0x238   : >> { %1336 = vst [vmem:[%s1991_s21 + $0xe0] sm:$0xff] %v1335_v46  ;;  %1338 = vst [vmem:[%s1991_s21 + $0xe8] sm:$0xff] %v1337_v47  ;;  %v1341_v49 = vld [vmem:[%s1995_s26 + $0xf8] sm:$0xff]  ;;  %s2503_s26 = smov %s2434_s6 }
 0x239   : >> { %1340 = vst [vmem:[%s1991_s21 + $0xf0] sm:$0xff] %v1339_v48  ;;  %1342 = vst [vmem:[%s1991_s21 + $0xf8] sm:$0xff] %v1341_v49  ;;  %s2502_s21 = smov %s1349_s7 }
 0x23a PF: > { %s2475_s8 = sand.u32 31, %s2509_s14   ;;  %s1568_s9 = sshll.u32 %s2367_s24, 8 }
 0x23b   : > { %s1354_s10 = scalar_lea.vmem %s2266_s18, %s1568_s9 [#allocation2]   ;;  %s1356_s11 = scalar_lea.vmem %s2361_s20, %s1568_s9  }
 0x23c   : > { %p1562_p13 = scmp.le.s32.totalorder %s2475_s8, 0 }
 0x23d   : > { %s2005_s12 = smov (!%p1562_p13), %s1356_s11   ;;  %s2009_s13 = smov (!%p1562_p13), %s1354_s10  }
 0x23e   : > { %1447 = sbr.rel (%p1562_p13) target bundleno = 591 (0x24f), region = 135  ;;  %s2013_s15 = smov (!%p1562_p13), 0  }
 0x23f   : > { %s2017_s16 = smov (!%p1562_p13), 0  }
 0x245 LB: >> { %v1366_v50 = vld [vmem:[%s2011_s13] sm:$0xff]  ;;  %s1368_s14 = sadd.s32 1, %s2015_s15  ;;  %s1360_s16 = sadd.s32 1, %s2019_s16   ;;  %s2019_s16 = sphi %s2017_s16, %s1360_s16   ;;  %s2015_s15 = sphi %s2013_s15, %s2014_s15   ;;  %s2011_s13 = sphi %s2009_s13, %s1373_s13   ;;  %s2007_s12 = sphi %s2005_s12, %s1374_s12  }
 0x246   : >> { %1367 = vst [vmem:[%s2007_s12] sm:$0xff] %v1366_v50  ;;  %p1369_p0 = scmp.ge.s32.totalorder %s1368_s14, %s2475_s8  ;;  %p1359_p1 = scmp.ge.s32.totalorder %s1360_s16, %s2475_s8 }
 0x248   : >> { %s2513_s14 = smov (%p1369_p0, %s1368_s14), 0  ;;  %1362 = sbr.rel (!%p1359_p1) target bundleno = 581 (0x245), region = 141 }
 0x249   : >> { %s1563_s18 = sshll.u32 %s2513_s14, 3  ;;  %s2014_s15 = smov %s2513_s14  }
 0x24a   : >> { %s1373_s13 = scalar_lea.vmem %s1354_s10, %s1563_s18 [#allocation2]   ;;  %s1374_s12 = scalar_lea.vmem %s1356_s11, %s1563_s18  }
 0x24f PF: > { %p12_p2 = scmp.ge.s32.totalorder %s2066_s22, 6   ;;  %s2505_s18 = smov %s1983_s19 }
 0x250   : > { %s2506_s19 = smov %s2074_s25  ;;  %s2507_s20 = smov %s2066_s22 }
 0x251   :  { %14 = sbr.rel (!%p12_p2) target bundleno = 2 (0x2), region = 152 }

</bundles_post_ra>
